<compile_context>
chip_gen: v7x
topology: tpu7x:2x2x1
jax: 0.10.0
libtpu: 0.0.40
codegen_flags: <defaults>
</compile_context>

<pallas_src>
import functools

import jax
import jax.numpy as jnp
from jax.experimental import pallas as pl
from jax.experimental.pallas import tpu as pltpu

_NEG_BIG = -1e30  # finite "minus infinity" (avoids -inf arithmetic rewrites)


def _round_up(a: int, m: int) -> int:
    return (a + m - 1) // m * m


def _vmem_limit_bytes() -> int:
    """Per-generation VMEM budget: <=96 MiB, and <=3/4 of physical VMEM."""
    try:
        cap = int(pltpu.get_tpu_info().vmem_capacity_bytes)
    except Exception:
        cap = 64 * 1024 * 1024  # conservative fallback (v7x per-core VMEM)
    return int(min(96 * 1024 * 1024, cap * 3 // 4))


def _fit_row_tile(tr, f_pad, fo_tot, b_pad, xb, ob, budget):
    """Shrink the row tile until the (double-buffered) footprint fits VMEM."""
    tr = max(_round_up(tr, 8), 8)
    while tr > 8:
        need = (2 * tr * f_pad * xb          # x tile (double buffered)
                + 2 * tr * fo_tot * ob       # output tile (double buffered)
                + 2 * f_pad * fo_tot * xb    # fused weights (worst case 2 bufs)
                + 2 * fo_tot * 4             # bias
                + 2 * tr * 4                 # batch ids
                + 2 * 8 * b_pad * 4)         # stats
        if need <= budget:
            break
        tr = max(_round_up(tr // 2, 8), 8)
    return tr


def _gate_stats_kernel(x_ref, wg_ref, bg_ref, batch_ref, pstats_ref):
    """Pass A (row-tiled, 'parallel'): gate scores + per-tile segment partials.

    pstats row 0: per-segment max of gate scores within this tile
    pstats row 1: per-segment sum of exp(score - tile_seg_max)
    rows 2..7:    zero (sublane padding)
    """
    tr = x_ref.shape[0]
    b_pad = pstats_ref.shape[1]

    scores_blk = jnp.dot(x_ref[...], wg_ref[...],
                         preferred_element_type=jnp.float32) + bg_ref[...]
    scores = scores_blk[:, 0:1]                                   # [TR, 1] f32
    b_ids = batch_ref[...]                                        # [TR, 1] i32
    valid = b_ids >= 0

    seg_iota = jax.lax.broadcasted_iota(jnp.int32, (tr, b_pad), 1)
    onehot = b_ids == seg_iota                                    # pads: all False
    onehot_f = onehot.astype(jnp.float32)

    seg_max = jnp.max(jnp.where(onehot, scores, _NEG_BIG),
                      axis=0, keepdims=True)                      # [1, B_pad]
    # Per-node gather of its own segment max (exp only on [TR, 1]).
    m_node = jnp.sum(onehot_f * seg_max, axis=1, keepdims=True)   # [TR, 1]
    e = jnp.where(valid, jnp.exp(scores - m_node), 0.0)           # [TR, 1]
    seg_sum = jnp.sum(onehot_f * e, axis=0, keepdims=True)        # [1, B_pad]

    rows = jax.lax.broadcasted_iota(jnp.int32, (8, b_pad), 0)
    pstats_ref[...] = jnp.where(rows == 0, seg_max,
                                jnp.where(rows == 1, seg_sum, 0.0)
                                ).astype(jnp.float32)


def _project_normalize_kernel(x_ref, w_ref, b_ref, batch_ref, stats_ref,
                              out_ref, *, gate_col, f_out):
    """Pass B (row-tiled, 'parallel'): fused projection + normalize + store.

    slab = x @ [W_nn | w_gate]  (gate score in column `gate_col`)
    gate = exp(score - m_seg) * inv_l_seg
    out[:, :f_out]  = gate * h        out[:, f_out:] = gate (broadcast)
    """
    slab = jnp.dot(x_ref[...], w_ref[...],
                   preferred_element_type=jnp.float32) + b_ref[...]
    tr, tot = slab.shape
    b_pad = stats_ref.shape[1]

    scores = slab[:, gate_col:gate_col + 1]                       # [TR, 1]
    b_ids = batch_ref[...]                                        # [TR, 1]
    valid = b_ids >= 0

    seg_iota = jax.lax.broadcasted_iota(jnp.int32, (tr, b_pad), 1)
    onehot_f = (b_ids == seg_iota).astype(jnp.float32)
    m_node = jnp.sum(onehot_f * stats_ref[0:1, :],
                     axis=1, keepdims=True)                       # [TR, 1]
    inv_l_node = jnp.sum(onehot_f * stats_ref[1:2, :],
                         axis=1, keepdims=True)                   # [TR, 1]

    gate = jnp.where(valid, jnp.exp(scores - m_node) * inv_l_node, 0.0)

    # Single full-width unmasked store: gate*h in lanes < f_out, gate elsewhere.
    lane = jax.lax.broadcasted_iota(jnp.int32, (tr, tot), 1)
    gate_b = jnp.broadcast_to(gate, (tr, tot))
    out_ref[...] = jnp.where(lane < f_out, gate_b * slab,
                             gate_b).astype(out_ref.dtype)


def global_attention(x, w_gate, b_gate, w_nn, b_nn, batch, num_segments,
                     *, row_tile=1024):
    """Returns (out [N, F_out], gate [N, 1]).

    x:      [N, F]
    w_gate: [F, 1],  b_gate: [1, 1]      (gate_nn = Linear(F, 1), W as [in, out])
    w_nn:   [F, Fo], b_nn:   [1, Fo]     (nn = Linear(F, Fo),     W as [in, out])
    batch:  [N] or [N, 1] int, 0 <= batch < num_segments
    """
    n, f = x.shape
    f_out = w_nn.shape[1]
    if batch is None:                      # PyTorch default: single graph
        batch = jnp.zeros((n, 1), jnp.int32)
        num_segments = 1

    f_pad = _round_up(f, 128)
    fo_pad = _round_up(max(f_out, 1), 128)
    if f_out % 128 == 0:
        fo_tot = fo_pad + 128              # gate needs its own trailing block
        gate_col = fo_pad
    else:
        fo_tot = fo_pad                    # gate packed into padding lanes
        gate_col = f_out
    b_pad = _round_up(max(int(num_segments), 1), 128)

    xb = jnp.dtype(x.dtype).itemsize
    ob = xb

    vmem_limit = _vmem_limit_bytes()
    tr = min(int(row_tile), _round_up(n, 8))
    tr = _fit_row_tile(tr, f_pad, fo_tot, b_pad, xb, ob,
                       int(vmem_limit * 0.9))
    n_pad = _round_up(n, tr)
    n_tiles = n_pad // tr

    # ---- Parameter packing / zero padding (tiny wrapper-side XLA glue). ----
    x_p = jnp.zeros((n_pad, f_pad), x.dtype).at[:n, :f].set(x)
    batch_p = (jnp.full((n_pad, 1), -1, jnp.int32)
               .at[:n, :].set(batch.astype(jnp.int32).reshape(n, 1)))

    # Pass-A gate weights in a single 128-wide block (column 0).
    wg_blk = (jnp.zeros((f_pad, 128), x.dtype)
              .at[:f, 0].set(w_gate[:, 0].astype(x.dtype)))
    bg_blk = (jnp.zeros((1, 128), jnp.float32)
              .at[0, 0].set(b_gate.reshape(()).astype(jnp.float32)))

    # Pass-B fused weights: W_nn in [:f_out], gate weight in column gate_col.
    w_fused = (jnp.zeros((f_pad, fo_tot), x.dtype)
               .at[:f, :f_out].set(w_nn.astype(x.dtype))
               .at[:f, gate_col].set(w_gate[:, 0].astype(x.dtype)))
    b_fused = (jnp.zeros((1, fo_tot), jnp.float32)
               .at[:, :f_out].set(b_nn.reshape(1, f_out).astype(jnp.float32))
               .at[:, gate_col].set(b_gate.reshape(()).astype(jnp.float32)))

    cp_par = pltpu.CompilerParams(dimension_semantics=("parallel",),
                                  vmem_limit_bytes=vmem_limit)

    ce_a = pl.CostEstimate(
        flops=2 * n_pad * f_pad * 128,
        transcendentals=n_pad,
        bytes_accessed=(n_pad * f_pad * xb + f_pad * 128 * xb + 128 * 4
                        + n_pad * 4 + n_tiles * 8 * b_pad * 4))
    ce_b = pl.CostEstimate(
        flops=2 * n_pad * f_pad * fo_tot,
        transcendentals=n_pad,
        bytes_accessed=(n_pad * f_pad * xb + f_pad * fo_tot * xb + fo_tot * 4
                        + n_pad * 4 + 8 * b_pad * 4 + n_pad * fo_tot * ob))

    # -------- Pass A: gate scores + per-tile per-segment partial stats. -----
    pstats = pl.pallas_call(
        _gate_stats_kernel,
        grid_spec=pltpu.PrefetchScalarGridSpec(
            num_scalar_prefetch=0,
            grid=(n_tiles,),
            in_specs=[
                pl.BlockSpec((tr, f_pad), lambda i: (i, 0)),
                pl.BlockSpec((f_pad, 128), lambda i: (0, 0)),   # resident Wg
                pl.BlockSpec((1, 128), lambda i: (0, 0)),       # resident bg
                pl.BlockSpec((tr, 1), lambda i: (i, 0)),
            ],
            out_specs=pl.BlockSpec((8, b_pad), lambda i: (i, 0)),
        ),
        out_shape=jax.ShapeDtypeStruct((n_tiles * 8, b_pad), jnp.float32),
        compiler_params=cp_par,
        cost_estimate=ce_a,
    )(x_p, wg_blk, bg_blk, batch_p)

    # Tiny cross-tile reduction (XLA): exact per-segment max + rescaled sums.
    p = pstats.reshape(n_tiles, 8, b_pad)
    pm = p[:, 0, :]                                     # [n_tiles, B_pad]
    ps = p[:, 1, :]                                     # [n_tiles, B_pad]
    m = jnp.max(pm, axis=0)                             # [B_pad]
    l = jnp.sum(ps * jnp.exp(pm - m[None, :]), axis=0)  # [B_pad]
    inv_l = 1.0 / (l + 1e-16)
    stats = (jnp.zeros((8, b_pad), jnp.float32)
             .at[0, :].set(m).at[1, :].set(inv_l))

    # -------- Pass B: fused projection + normalize + single output write. ---
    out_slab = pl.pallas_call(
        functools.partial(_project_normalize_kernel,
                          gate_col=gate_col, f_out=f_out),
        grid_spec=pltpu.PrefetchScalarGridSpec(
            num_scalar_prefetch=0,
            grid=(n_tiles,),
            in_specs=[
                pl.BlockSpec((tr, f_pad), lambda i: (i, 0)),
                pl.BlockSpec((f_pad, fo_tot), lambda i: (0, 0)),  # resident W
                pl.BlockSpec((1, fo_tot), lambda i: (0, 0)),      # resident b
                pl.BlockSpec((tr, 1), lambda i: (i, 0)),
                pl.BlockSpec((8, b_pad), lambda i: (0, 0)),       # resident stats
            ],
            out_specs=pl.BlockSpec((tr, fo_tot), lambda i: (i, 0)),
        ),
        out_shape=jax.ShapeDtypeStruct((n_pad, fo_tot), x.dtype),
        compiler_params=cp_par,
        cost_estimate=ce_b,
    )(x_p, w_fused, b_fused, batch_p, stats)

    out = out_slab[:n, :f_out]
    gate = out_slab[:n, f_out:f_out + 1]
    return out, gate


def _reference(x, w_gate, b_gate, w_nn, b_nn, batch, num_segments):
    """Pure-JAX reference mirroring the PyTorch forward."""
    scores = x @ w_gate + b_gate                                   # [N, 1]
    h = x @ w_nn + b_nn                                            # [N, Fo]
    seg_max = jax.ops.segment_max(scores[:, 0], batch[:, 0],
                                  num_segments=num_segments)
    e = jnp.exp(scores[:, 0] - seg_max[batch[:, 0]])
    seg_sum = jax.ops.segment_sum(e, batch[:, 0],
                                  num_segments=num_segments)
    gate = (e / (seg_sum[batch[:, 0]] + 1e-16))[:, None]           # [N, 1]
    return gate * h, gate


if __name__ == "__main__":
    # Small deterministic problem: 64 nodes, 32 features, 4 graphs.
    N, F, F_OUT, B = 64, 32, 32, 4

    key = jax.random.PRNGKey(0)
    kx, kwg, kbg, kwn, kbn = jax.random.split(key, 5)

    x = jax.random.normal(kx, (N, F), dtype=jnp.float32)
    w_gate = jax.random.normal(kwg, (F, 1), dtype=jnp.float32) * 0.1
    b_gate = jax.random.normal(kbg, (1, 1), dtype=jnp.float32) * 0.1
    w_nn = jax.random.normal(kwn, (F, F_OUT), dtype=jnp.float32) * 0.1
    b_nn = jax.random.normal(kbn, (1, F_OUT), dtype=jnp.float32) * 0.1

    # Node -> graph assignment (16 nodes per graph), int32 column vector.
    batch = jnp.repeat(jnp.arange(B, dtype=jnp.int32), N // B)[:, None]

    out, gate = global_attention(x, w_gate, b_gate, w_nn, b_nn, batch, B)
    jax.block_until_ready((out, gate))

    ref_out, ref_gate = _reference(x, w_gate, b_gate, w_nn, b_nn, batch, B)
    assert jnp.allclose(out, ref_out, atol=1e-5, rtol=1e-4), "out mismatch"
    assert jnp.allclose(gate, ref_gate, atol=1e-5, rtol=1e-4), "gate mismatch"
    # gates sum to 1 per graph
    assert jnp.allclose(
        jax.ops.segment_sum(gate[:, 0], batch[:, 0], num_segments=B),
        jnp.ones((B,)), atol=1e-5), "gate does not sum to 1 per graph"

    # Exercise the multi-tile (grid > 1) partial-stats reduction path.
    out2, gate2 = global_attention(x, w_gate, b_gate, w_nn, b_nn, batch, B,
                                   row_tile=32)
    jax.block_until_ready((out2, gate2))
    assert jnp.allclose(out2, ref_out, atol=1e-5, rtol=1e-4), "tiled out mismatch"
    assert jnp.allclose(gate2, ref_gate, atol=1e-5, rtol=1e-4), "tiled gate mismatch"
    assert jnp.allclose(
        jax.ops.segment_sum(gate2[:, 0], batch[:, 0], num_segments=B),
        jnp.ones((B,)), atol=1e-5), "tiled gate does not sum to 1 per graph"

    print("KERNEL_OK")
</pallas_src>

<mosaic_0001>
module attributes {stable_mosaic.version = 11 : i64} {
  func.func @_gate_stats_kernel(%arg0: i32, %arg1: memref<64x128xf32, #tpu.memory_space<vmem>>, %arg2: memref<128x128xf32, #tpu.memory_space<vmem>>, %arg3: memref<1x128xf32, #tpu.memory_space<vmem>>, %arg4: memref<64x1xi32, #tpu.memory_space<vmem>>, %arg5: memref<8x128xf32, #tpu.memory_space<vmem>>) attributes {dimension_semantics = [#tpu.dimension_semantics<parallel>], iteration_bounds = array<i64: 1>, scalar_prefetch = 0 : i64, scratch_operands = 0 : i64, tpu.core_type = #tpu.core_type<tc>, window_params = [{transform_indices = @transform_0, window_bounds = array<i64: 64, 128>}, {pipeline_mode = #tpu.pipeline_mode<synchronous>, transform_indices = @transform_1, window_bounds = array<i64: 128, 128>}, {pipeline_mode = #tpu.pipeline_mode<synchronous>, transform_indices = @transform_2, window_bounds = array<i64: 1, 128>}, {transform_indices = @transform_3, window_bounds = array<i64: 64, 1>}, {transform_indices = @transform_4, window_bounds = array<i64: 8, 128>}]} {
    %c0 = arith.constant 0 : index
    %c0_0 = arith.constant 0 : index
    %0 = vector.load %arg1[%c0, %c0_0] : memref<64x128xf32, #tpu.memory_space<vmem>>, vector<64x128xf32>
    %c0_1 = arith.constant 0 : index
    %c0_2 = arith.constant 0 : index
    %1 = vector.load %arg2[%c0_1, %c0_2] : memref<128x128xf32, #tpu.memory_space<vmem>>, vector<128x128xf32>
    %cst = arith.constant dense<0.000000e+00> : vector<64x128xf32>
    %2 = tpu.matmul %0, %1, %cst {dimension_numbers = #tpu.dot_dimension_numbers<[1], [0], [0], [1], [0, 0, 1, 1], [], []>} : vector<64x128xf32>, vector<128x128xf32>, vector<64x128xf32> -> vector<64x128xf32>
    %c0_3 = arith.constant 0 : index
    %c0_4 = arith.constant 0 : index
    %3 = vector.load %arg3[%c0_3, %c0_4] : memref<1x128xf32, #tpu.memory_space<vmem>>, vector<1x128xf32>
    %4 = vector.broadcast %3 : vector<1x128xf32> to vector<64x128xf32>
    %5 = arith.addf %2, %4 : vector<64x128xf32>
    %6 = vector.extract_strided_slice %5 {offsets = [0, 0], sizes = [64, 1], strides = [1, 1]} : vector<64x128xf32> to vector<64x1xf32>
    %c0_5 = arith.constant 0 : index
    %c0_6 = arith.constant 0 : index
    %7 = vector.load %arg4[%c0_5, %c0_6] : memref<64x1xi32, #tpu.memory_space<vmem>>, vector<64x1xi32>
    %c0_i32 = arith.constant 0 : i32
    %8 = vector.broadcast %c0_i32 : i32 to vector<64x1xi32>
    %9 = arith.cmpi sge, %7, %8 : vector<64x1xi32>
    %10 = tpu.iota {dimensions = array<i32: 1>} : vector<64x128xi32>
    %11 = vector.broadcast %7 : vector<64x1xi32> to vector<64x128xi32>
    %12 = arith.cmpi eq, %11, %10 : vector<64x128xi32>
    %13 = arith.extui %12 : vector<64x128xi1> to vector<64x128xi32>
    %14 = arith.sitofp %13 : vector<64x128xi32> to vector<64x128xf32>
    %cst_7 = arith.constant -1.000000e+30 : f32
    %15 = vector.shape_cast %6 : vector<64x1xf32> to vector<64x1xf32>
    %16 = vector.broadcast %15 : vector<64x1xf32> to vector<64x128xf32>
    %17 = vector.broadcast %cst_7 : f32 to vector<64x128xf32>
    %18 = arith.select %12, %16, %17 : vector<64x128xi1>, vector<64x128xf32>
    %cst_8 = arith.constant dense<0xFF800000> : vector<128xf32>
    %19 = vector.multi_reduction <maximumf>, %18, %cst_8 [0] : vector<64x128xf32> to vector<128xf32>
    %20 = vector.shape_cast %19 : vector<128xf32> to vector<1x128xf32>
    %21 = vector.broadcast %20 : vector<1x128xf32> to vector<64x128xf32>
    %22 = arith.mulf %14, %21 : vector<64x128xf32>
    %cst_9 = arith.constant dense<0.000000e+00> : vector<64xf32>
    %23 = vector.multi_reduction <add>, %22, %cst_9 [1] : vector<64x128xf32> to vector<64xf32>
    %24 = vector.shape_cast %23 : vector<64xf32> to vector<64x1xf32>
    %25 = arith.subf %6, %24 : vector<64x1xf32>
    %26 = math.exp %25 : vector<64x1xf32>
    %cst_10 = arith.constant 0.000000e+00 : f32
    %27 = vector.broadcast %cst_10 : f32 to vector<64x1xf32>
    %28 = arith.select %9, %26, %27 : vector<64x1xi1>, vector<64x1xf32>
    %29 = vector.broadcast %28 : vector<64x1xf32> to vector<64x128xf32>
    %30 = arith.mulf %14, %29 : vector<64x128xf32>
    %cst_11 = arith.constant dense<0.000000e+00> : vector<128xf32>
    %31 = vector.multi_reduction <add>, %30, %cst_11 [0] : vector<64x128xf32> to vector<128xf32>
    %32 = vector.shape_cast %31 : vector<128xf32> to vector<1x128xf32>
    %33 = tpu.iota {dimensions = array<i32: 0>} : vector<8x128xi32>
    %c0_i32_12 = arith.constant 0 : i32
    %34 = vector.broadcast %c0_i32_12 : i32 to vector<8x128xi32>
    %35 = arith.cmpi eq, %33, %34 : vector<8x128xi32>
    %c1_i32 = arith.constant 1 : i32
    %36 = vector.broadcast %c1_i32 : i32 to vector<8x128xi32>
    %37 = arith.cmpi eq, %33, %36 : vector<8x128xi32>
    %cst_13 = arith.constant 0.000000e+00 : f32
    %38 = vector.shape_cast %32 : vector<1x128xf32> to vector<1x128xf32>
    %39 = vector.broadcast %38 : vector<1x128xf32> to vector<8x128xf32>
    %40 = vector.broadcast %cst_13 : f32 to vector<8x128xf32>
    %41 = arith.select %37, %39, %40 : vector<8x128xi1>, vector<8x128xf32>
    %42 = vector.shape_cast %20 : vector<1x128xf32> to vector<1x128xf32>
    %43 = vector.broadcast %42 : vector<1x128xf32> to vector<8x128xf32>
    %44 = arith.select %35, %43, %41 : vector<8x128xi1>, vector<8x128xf32>
    %c0_14 = arith.constant 0 : index
    %c0_15 = arith.constant 0 : index
    %45 = vector.load %arg5[%c0_14, %c0_15] : memref<8x128xf32, #tpu.memory_space<vmem>>, vector<8x128xf32>
    tpu.vector_store %arg5[%c0_14, %c0_15], %44 {strides = array<i32>} : memref<8x128xf32, #tpu.memory_space<vmem>>, vector<8x128xf32>,
    return
  }
  func.func @transform_0(%arg0: i32) -> (i32, i32) {
    %c0_i32 = arith.constant 0 : i32
    %c0_i32_0 = arith.constant 0 : i32
    return %arg0, %c0_i32 : i32, i32
  }
  func.func @transform_1(%arg0: i32) -> (i32, i32) {
    %c0_i32 = arith.constant 0 : i32
    %c0_i32_0 = arith.constant 0 : i32
    %c0_i32_1 = arith.constant 0 : i32
    return %c0_i32, %c0_i32_0 : i32, i32
  }
  func.func @transform_2(%arg0: i32) -> (i32, i32) {
    %c0_i32 = arith.constant 0 : i32
    %c0_i32_0 = arith.constant 0 : i32
    %c0_i32_1 = arith.constant 0 : i32
    return %c0_i32, %c0_i32_0 : i32, i32
  }
  func.func @transform_3(%arg0: i32) -> (i32, i32) {
    %c0_i32 = arith.constant 0 : i32
    %c0_i32_0 = arith.constant 0 : i32
    return %arg0, %c0_i32 : i32, i32
  }
  func.func @transform_4(%arg0: i32) -> (i32, i32) {
    %c0_i32 = arith.constant 0 : i32
    %c0_i32_0 = arith.constant 0 : i32
    return %arg0, %c0_i32 : i32, i32
  }
}

</mosaic_0001>

<bundles_post_ra>
// kernel: tpu_custom_call.1
= control target key start
LH: loop header
LB: loop body
LE: loop exit
PB: predicated region body
PF: predicated region fallthrough
CT: control target
= control target key end

     0   :  { %9 = vsyncpa [#allocation3], 0  ;;  %s872_s0 = inlined_call_operand.vmem [shape: f32[64,128], index: 0, kind: input, shape index: {}]   ;;  %s873_s1 = inlined_call_operand.hbm [shape: f32[128,128], index: 1, kind: input, shape index: {}]   ;;  %s874_s2 = inlined_call_operand.vmem [shape: f32[1,128], index: 2, kind: input, shape index: {}]   ;;  %s875_s3 = inlined_call_operand.vmem [shape: s32[64,1], index: 3, kind: input, shape index: {}]   ;;  %s876_s4 = inlined_call_operand.hbm [shape: f32[8,128], index: 4, kind: output, shape index: {}]  }
   0x1   :  { %10 = vsyncpa [#allocation4], 0  ;;  %s631_s15 = smov [#allocation2]   ;;  %s583_s19 = scalar_lea.hbm %s873_s1, 2048 }
   0x2   :  { %s18_s16 = sshll.u32 %s631_s15, 4  ;;  %p584_p0 = scmp.ne.s32.totalorder %s873_s1, %s583_s19  ;;  %s19_s16 = int_to_ptr.vmem [resolvable:$true] %s18_s16 }
   0x3   :  { %p587_p1 = scmp.lt.u32.totalorder %s583_s19, %s873_s1 }
   0x5   :  { %p589_p2 = pnand %p587_p1, %p584_p0 }
   0x7   :  { %592 = shalt.err (!%p589_p2)
}
   0x8   :  { %s593_s24 = scalar_lea.vmem %s19_s16, 2048  ;;  %p598_p4 = scmp.lt.s32.totalorder %s19_s16, %s19_s16 }
   0x9   :  { %p594_p3 = scmp.ne.s32.totalorder %s19_s16, %s593_s24  ;;  %p599_p5 = scmp.lt.s32.totalorder %s593_s24, %s593_s24 }
   0xb   :  { %p600_p6 = por %p599_p5, %p598_p4 }
   0xd   :  { %p601_p7 = pnand %p600_p6, %p594_p3 }
   0xf   :  { %604 = shalt.err (!%p601_p7)
}
  0x10   :  { %s632_s25 = smov 128   ;;  %s633_s26 = smov 8  }
  0x11   :  { %24 = dma.hbm_to_vmem [thread:$0]  %s873_s1, 2048, %s19_s16, [#allocation3], %s632_s25, %s632_s25, %s633_s26  }
  0x12   :  { %627 = dma.done.wait [#allocation3], 2048  }
  0x13   :  { %628 = vsyncadd [#allocation3], 4294965248  ;;  %v634_v0 = vmov 0   ;;  %v40_v1 = vld [vmem:[#allocation2] sm:$0xff]  ;;  %v41_v2 = vld [vmem:[#allocation2 + $0x8] sm:$0xff] }
  0x14   :  { %566 = vset.pattern.permute.xlu1 %v634_v0  ;;  %565 = vset.pattern.permute.xlu0 %v634_v0  ;;  %v42_v3 = vld [vmem:[#allocation2 + $0x10] sm:$0xff]  ;;  %v511_v4 = vpack.c.bf16 %v41_v2, %v40_v1  ;;  %v43_v5 = vld [vmem:[#allocation2 + $0x18] sm:$0xff]  ;;  %v44_v7 = vld [vmem:[#allocation2 + $0x20] sm:$0xff] }
  0x15   :  { %v515_v6 = vpack.c.bf16 %v43_v5, %v42_v3  ;;  %v45_v8 = vld [vmem:[#allocation2 + $0x28] sm:$0xff]  ;;  %v32_v10 = vld [vmem:[%s872_s0] sm:$0xff]  ;;  %v46_v11 = vld [vmem:[#allocation2 + $0x30] sm:$0xff]  ;;  %v184_v3 = vlaneseq }
  0x16   :  { %512 = vmatprep.subr.bf16.mxu0 %v511_v4  ;;  %543 = vmatprep.subr.bf16.mxu1 %v511_v4  ;;  %v519_v9 = vpack.c.bf16 %v45_v8, %v44_v7  ;;  %v47_v12 = vld [vmem:[#allocation2 + $0x38] sm:$0xff]  ;;  %v36_v13 = vld [vmem:[%s872_s0 + $0x20] sm:$0xff]  ;;  %v683_v14 = vld [vmem:[%s875_s3 + $0x10] sm:$0xff] }
  0x17   :  { %514 = vmatpush3.bf16.msra.mxu0 %v511_v4  ;;  %551 = vmatpush3.bf16.msra.mxu1 %v511_v4  ;;  %v688_v15 = vld [vmem:[%s875_s3] sm:$0xff]  ;;  %v523_v16 = vpack.c.bf16 %v47_v12, %v46_v11  ;;  %v49_v18 = vld [vmem:[#allocation2 + $0x48] sm:$0xff]  ;;  %v695_v19 = vld [vmem:[%s875_s3 + $0x18] sm:$0xff]  ;;  %vm178_vm11 = vcmp.ge.s32.totalorder %v683_v14, 0 }
  0x18   :  { %516 = vmatprep.subr.bf16.mxu0 %v515_v6  ;;  %544 = vmatprep.subr.bf16.mxu1 %v515_v6  ;;  %v48_v17 = vld [vmem:[#allocation2 + $0x40] sm:$0xff]  ;;  %v700_v20 = vld [vmem:[%s875_s3 + $0x8] sm:$0xff]  ;;  %v50_v22 = vld [vmem:[#allocation2 + $0x50] sm:$0xff]  ;;  %vm176_vm9 = vcmp.ge.s32.totalorder %v688_v15, 0  ;;  %vm179_vm13 = vcmp.ge.s32.totalorder %v695_v19, 0 }
  0x19   :  { %499 = vmatprep.mubr.f32.mxu0 %v32_v10  ;;  %505 = vmatprep.mubr.f32.mxu1 %v36_v13  ;;  %v527_v21 = vpack.c.bf16 %v49_v18, %v48_v17  ;;  %v51_v23 = vld [vmem:[#allocation2 + $0x58] sm:$0xff]  ;;  %v707_v24 = vld [vmem:[%s875_s3 + $0x28] sm:$0xff]  ;;  %v712_v25 = vld [vmem:[%s875_s3 + $0x20] sm:$0xff]  ;;  %vm177_vm8 = vcmp.ge.s32.totalorder %v700_v20, 0 }
  0x1a   :  { %193 = vperm.xlu1 %566, %v683_v14   ;;  %187 = vperm.xlu0 %565, %v688_v15   ;;  %v531_v26 = vpack.c.bf16 %v51_v23, %v50_v22  ;;  %v52_v27 = vld [vmem:[#allocation2 + $0x60] sm:$0xff]  ;;  %v53_v28 = vld [vmem:[#allocation2 + $0x68] sm:$0xff]  ;;  %v719_v29 = vld [vmem:[%s875_s3 + $0x38] sm:$0xff]  ;;  %vm180_vm10 = vcmp.ge.s32.totalorder %v712_v25, 0  ;;  %vm181_vm14 = vcmp.ge.s32.totalorder %v707_v24, 0 }
  0x1b   :  { %518 = vmatpush3.bf16.msra.mxu0 %v515_v6  ;;  %552 = vmatpush3.bf16.msra.mxu1 %v515_v6  ;;  %v724_v30 = vld [vmem:[%s875_s3 + $0x30] sm:$0xff]  ;;  %v535_v31 = vpack.c.bf16 %v53_v28, %v52_v27  ;;  %v55_v33 = vld [vmem:[#allocation2 + $0x78] sm:$0xff]  ;;  %v33_v35 = vld [vmem:[%s872_s0 + $0x8] sm:$0xff]  ;;  %v185_v6 = vand.u32 127, %v184_v3  ;;  %vm183_vm15 = vcmp.ge.s32.totalorder %v719_v29, 0 }
  0x1c   :  { %520 = vmatprep.subr.bf16.mxu0 %v519_v9  ;;  %545 = vmatprep.subr.bf16.mxu1 %v519_v9  ;;  %v54_v32 = vld [vmem:[#allocation2 + $0x70] sm:$0xff]  ;;  %v37_v36 = vld [vmem:[%s872_s0 + $0x28] sm:$0xff]  ;;  %v35_v39 = vld [vmem:[%s872_s0 + $0x18] sm:$0xff]  ;;  %vm182_vm12 = vcmp.ge.s32.totalorder %v724_v30, 0 }
  0x1d   :  { %v539_v34 = vpack.c.bf16 %v55_v33, %v54_v32  ;;  %v34_v37 = vld [vmem:[%s872_s0 + $0x10] sm:$0xff]  ;;  %v39_v40 = vld [vmem:[%s872_s0 + $0x38] sm:$0xff]  ;;  %v434_v41 = vld [vmem:[%s874_s2] ss:$0 sm:$0xff] }
  0x1e   :  { %196 = vperm.xlu1 %566, %v695_v19   ;;  %190 = vperm.xlu0 %565, %v700_v20   ;;  %v38_v38 = vld [vmem:[%s872_s0 + $0x30] sm:$0xff]  ;;  %s636_s0 = smov [#allocation5]  }
  0x1f   :  { %522 = vmatpush3.bf16.msra.mxu0 %v519_v9  ;;  %553 = vmatpush3.bf16.msra.mxu1 %v519_v9  ;;  %s425_s2 = sshll.u32 %s636_s0, 4  ;;  %s426_s2 = int_to_ptr.vmem [resolvable:$true] %s425_s2 }
  0x20   :  { %524 = vmatprep.subr.bf16.mxu0 %v523_v16  ;;  %546 = vmatprep.subr.bf16.mxu1 %v523_v16  ;;  %s605_s8 = scalar_lea.vmem %s426_s2, 128  ;;  %p610_p9 = scmp.lt.s32.totalorder %s426_s2, %s426_s2 }
  0x21   :  { %p606_p8 = scmp.ne.s32.totalorder %s426_s2, %s605_s8  ;;  %p611_p10 = scmp.lt.s32.totalorder %s605_s8, %s605_s8 }
  0x22   :  { %202 = vperm.xlu1 %566, %v707_v24   ;;  %199 = vperm.xlu0 %565, %v712_v25  }
  0x23   :  { %526 = vmatpush3.bf16.msra.mxu0 %v523_v16  ;;  %554 = vmatpush3.bf16.msra.mxu1 %v523_v16  ;;  %p612_p11 = por %p611_p10, %p610_p9 }
  0x24   :  { %528 = vmatprep.subr.bf16.mxu0 %v527_v21  ;;  %547 = vmatprep.subr.bf16.mxu1 %v527_v21 }
  0x25   :  { %p613_p12 = pnand %p612_p11, %p606_p8 }
  0x26   :  { %208 = vperm.xlu1 %566, %v719_v29   ;;  %205 = vperm.xlu0 %565, %v724_v30  }
  0x27   :  { %530 = vmatpush3.bf16.msra.mxu0 %v527_v21  ;;  %555 = vmatpush3.bf16.msra.mxu1 %v527_v21 }
  0x28   :  { %532 = vmatprep.subr.bf16.mxu0 %v531_v26  ;;  %548 = vmatprep.subr.bf16.mxu1 %v531_v26 }
  0x2b   :  { %534 = vmatpush3.bf16.msra.mxu0 %v531_v26  ;;  %556 = vmatpush3.bf16.msra.mxu1 %v531_v26 }
  0x2c   :  { %536 = vmatprep.subr.bf16.mxu0 %v535_v31  ;;  %549 = vmatprep.subr.bf16.mxu1 %v535_v31 }
  0x2f   :  { %538 = vmatpush3.bf16.msra.mxu0 %v535_v31  ;;  %557 = vmatpush3.bf16.msra.mxu1 %v535_v31 }
  0x30   :  { %540 = vmatprep.subr.bf16.mxu0 %v539_v34  ;;  %550 = vmatprep.subr.bf16.mxu1 %v539_v34 }
  0x33   :  { %542 = vmatpush3.bf16.msra.mxu0 %v539_v34  ;;  %558 = vmatpush3.bf16.msra.mxu1 %v539_v34 }
  0x36   :  { %500 = vmatmul.mubr.f32.vlgmr.msra.gmra.mrb[0].mxu0 %v33_v35  ;;  %506 = vmatmul.mubr.f32.vlgmr.msra.gmra.mrb[0].mxu1 %v37_v36 }
  0x37   :  { %502 = vmatprep.mubr.f32.mxu0 %v34_v37  ;;  %508 = vmatprep.mubr.f32.mxu1 %v38_v38 }
  0x3a   :  { %503 = vmatmul.mubr.f32.gmra.mrb[2].mxu0 %v35_v39  ;;  %509 = vmatmul.mubr.f32.gmra.mrb[2].mxu1 %v39_v40 }
  0x99   :  { %v194_v58 = vpop.permute.xlu1 %193  ;;  %v188_v59 = vpop.permute.xlu0 %187 }
  0x9a   :  { %vm212_vm2 = vcmp.eq.s32.totalorder %v194_v58, %v185_v6  ;;  %vm210_vm3 = vcmp.eq.s32.totalorder %v188_v59, %v185_v6 }
  0x9d   :  { %v197_v60 = vpop.permute.xlu1 %196  ;;  %v191_v61 = vpop.permute.xlu0 %190 }
  0x9e   :  { %vm213_vm4 = vcmp.eq.s32.totalorder %v197_v60, %v185_v6  ;;  %vm211_vm5 = vcmp.eq.s32.totalorder %v191_v61, %v185_v6 }
  0xa1   :  { %v773_v62 = vpop.permute.xlu1 %202  ;;  %v200_v63 = vpop.permute.xlu0 %199 }
  0xa2   :  { %vm215_vm0 = vcmp.eq.s32.totalorder %v773_v62, %v185_v6  ;;  %vm214_vm1 = vcmp.eq.s32.totalorder %v200_v63, %v185_v6 }
  0xa5   :  { %v775_v0 = vpop.permute.xlu1 %208  ;;  %v206_v1 = vpop.permute.xlu0 %205 }
  0xa6   :  { %vm217_vm6 = vcmp.eq.s32.totalorder %v775_v0, %v185_v6  ;;  %vm216_vm7 = vcmp.eq.s32.totalorder %v206_v1, %v185_v6 }
 0x109   :  { %v501_v42 = vpop.f32.mrb[0].mxu0  ;;  %v507_v43 = vpop.f32.mrb[0].mxu1 }
 0x10a   :  { %v749_v44 = vadd.f32 %v501_v42, %v434_v41  ;;  %v129_v45 = vpop.f32.mrb[1].mxu0  ;;  %v149_v46 = vpop.f32.mrb[1].mxu1  ;;  %v753_v48 = vadd.f32 %v507_v43, %v434_v41 }
 0x10b   :  { %v751_v47 = vadd.f32 %v434_v41, %v129_v45  ;;  %v756_v49 = vadd.f32 %v434_v41, %v149_v46 }
 0x10c   :  { %241 = vperm.xlu1 %566, %v749_v44  }
 0x10d   :  { %236 = vperm.xlu0 %565, %v751_v47   ;;  %v504_v50 = vpop.f32.mrb[2].mxu0  ;;  %v510_v51 = vpop.f32.mrb[2].mxu1 }
 0x10e   :  { %v139_v52 = vpop.f32.mrb[3].mxu0  ;;  %v159_v53 = vpop.f32.mrb[3].mxu1  ;;  %v760_v54 = vadd.f32 %v504_v50, %v434_v41  ;;  %v765_v56 = vadd.f32 %v510_v51, %v434_v41 }
 0x10f   :  { %v762_v55 = vadd.f32 %v434_v41, %v139_v52  ;;  %v768_v57 = vadd.f32 %v434_v41, %v159_v53  ;;  %v635_v41 = vmov 0.0  }
 0x110   :  { %261 = vperm.xlu1 %566, %v753_v48   ;;  %v793_v42 = vsel %vm210_vm3, 1.0, %v635_v41  ;;  %v796_v43 = vsel %vm211_vm5, 1.0, %v635_v41  ;;  %v803_v50 = vsel %vm212_vm2, 1.0, %v635_v41  ;;  %v806_v51 = vsel %vm214_vm1, 1.0, %v635_v41 }
 0x111   :  { %256 = vperm.xlu0 %565, %v756_v49   ;;  %v813_v59 = vsel %vm213_vm4, 1.0, %v635_v41  ;;  %v816_v61 = vsel %vm216_vm7, 1.0, %v635_v41  ;;  %v830_v1 = vsel %vm217_vm6, 1.0, %v635_v41 }
 0x114   :  { %251 = vperm.xlu1 %566, %v760_v54  }
 0x115   :  { %246 = vperm.xlu0 %565, %v762_v55  }
 0x118   :  { %271 = vperm.xlu1 %566, %v765_v56  }
 0x119   :  { %266 = vperm.xlu0 %565, %v768_v57  }
 0x18b   :  { %v242_v2 = vpop.permute.xlu1 %241 }
 0x18c   :  { %v237_v4 = vpop.permute.xlu0 %236  ;;  %v275_v12 = vsel %vm211_vm5, %v242_v2, -1e+30  ;;  %v824_v2 = vsel %vm215_vm0, 1.0, %v635_v41 }
 0x18d   :  { %v274_v13 = vsel %vm210_vm3, %v237_v4, -1e+30 }
 0x18f   :  { %v262_v5 = vpop.permute.xlu1 %261 }
 0x190   :  { %v257_v7 = vpop.permute.xlu0 %256  ;;  %v279_v10 = vsel %vm215_vm0, %v262_v5, -1e+30 }
 0x191   :  { %v278_v11 = vsel %vm214_vm1, %v257_v7, -1e+30  ;;  %v283_v17 = vmax.f32 %v275_v12, %v279_v10 }
 0x192   :  { %v282_v18 = vmax.f32 %v274_v13, %v278_v11 }
 0x193   :  { %v252_v8 = vpop.permute.xlu1 %251 }
 0x194   :  { %v247_v9 = vpop.permute.xlu0 %246  ;;  %v277_v21 = vsel %vm213_vm4, %v252_v8, -1e+30  ;;  %v286_v32 = vmax.f32 %v282_v18, %v283_v17 }
 0x195   :  { %v276_v26 = vsel %vm212_vm2, %v247_v9, -1e+30 }
 0x197   :  { %v272_v16 = vpop.permute.xlu1 %271 }
 0x198   :  { %v281_v22 = vsel %vm217_vm6, %v272_v16, -1e+30  ;;  %v267_v23 = vpop.permute.xlu0 %266 }
 0x199   :  { %v285_v27 = vmax.f32 %v277_v21, %v281_v22  ;;  %v280_v28 = vsel %vm216_vm7, %v267_v23, -1e+30 }
 0x19a   :  { %v284_v31 = vmax.f32 %v276_v26, %v280_v28 }
 0x19c   :  { %v287_v33 = vmax.f32 %v284_v31, %v285_v27 }
 0x19e   :  { %v288_v34 = vmax.f32 %v286_v32, %v287_v33 }
 0x1a0   :  { %v289_v35 = vrot.slane %v288_v34, 4 }
 0x1a2   :  { %v290_v36 = vmax.f32 %v288_v34, %v289_v35 }
 0x1a4   :  { %v291_v37 = vrot.slane %v290_v36, 2 }
 0x1a6   :  { %v292_v38 = vmax.f32 %v290_v36, %v291_v37 }
 0x1a8   :  { %v293_v39 = vrot.slane %v292_v38, 1 }
 0x1aa   :  { %v790_v40 = vmax.f32 %v292_v38, %v293_v39 }
 0x1ac   :  { %v296_v45 = vmul.f32 %v796_v43, %v790_v40  ;;  %v295_v46 = vmul.f32 %v793_v42, %v790_v40  ;;  %v299_v52 = vmul.f32 %v806_v51, %v790_v40  ;;  %v297_v53 = vmul.f32 %v803_v50, %v790_v40 }
 0x1ad   :  { %v301_v58 = vmul.f32 %v816_v61, %v790_v40  ;;  %v298_v63 = vmul.f32 %v813_v59, %v790_v40  ;;  %v300_v60 = vmul.f32 %v824_v2, %v790_v40  ;;  %v302_v4 = vmul.f32 %v830_v1, %v790_v40 }
 0x1ae   :  { %305 = vadd.xlane.f32.xlu1 %v296_v45  ;;  %303 = vadd.xlane.f32.xlu0 %v295_v46 }
 0x1b2   :  { %311 = vadd.xlane.f32.xlu1 %v299_v52  ;;  %307 = vadd.xlane.f32.xlu0 %v297_v53 }
 0x1b6   :  { %315 = vadd.xlane.f32.xlu1 %v301_v58  ;;  %309 = vadd.xlane.f32.xlu0 %v298_v63 }
 0x1ba   :  { %313 = vadd.xlane.f32.xlu0 %v300_v60 }
 0x1be   :  { %317 = vadd.xlane.f32.xlu0 %v302_v4 }
 0x23b   :  { %v306_v5 = vpop.xlane.xlu1 %305  ;;  %v304_v7 = vpop.xlane.xlu0 %303 }
 0x23c   :  { %v320_v8 = vsub.f32 %v749_v44, %v306_v5  ;;  %v319_v62 = vsub.f32 %v751_v47, %v304_v7 }
 0x23e   :  { %v329_v9 = vmul.f32 1.442695, %v320_v8  ;;  %v327_v10 = vmul.f32 1.442695, %v319_v62 }
 0x23f   :  { %v312_v11 = vpop.xlane.xlu1 %311  ;;  %v308_v12 = vpop.xlane.xlu0 %307 }
 0x240   :  { %567 = vpow2.f32 %v329_v9  ;;  %v323_v13 = vsub.f32 %v756_v49, %v312_v11  ;;  %v321_v0 = vsub.f32 %v762_v55, %v308_v12 }
 0x241   :  { %569 = vpow2.f32 %v327_v10 }
 0x242   :  { %v335_v6 = vmul.f32 1.442695, %v323_v13  ;;  %v331_v16 = vmul.f32 1.442695, %v321_v0 }
 0x243   :  { %v316_v17 = vpop.xlane.xlu1 %315  ;;  %v310_v18 = vpop.xlane.xlu0 %309 }
 0x244   :  { %571 = vpow2.f32 %v335_v6  ;;  %v325_v21 = vsub.f32 %v768_v57, %v316_v17  ;;  %v322_v44 = vsub.f32 %v760_v54, %v310_v18 }
 0x245   :  { %573 = vpow2.f32 %v331_v16 }
 0x246   :  { %v339_v47 = vmul.f32 1.442695, %v325_v21  ;;  %v333_v22 = vmul.f32 1.442695, %v322_v44 }
 0x247   :  { %v314_v23 = vpop.xlane.xlu0 %313 }
 0x248   :  { %575 = vpow2.f32 %v339_v47  ;;  %v324_v26 = vsub.f32 %v753_v48, %v314_v23 }
 0x249   :  { %577 = vpow2.f32 %v333_v22 }
 0x24a   :  { %v568_v49 = vpop.eup %567  ;;  %v337_v55 = vmul.f32 1.442695, %v324_v26 }
 0x24b   :  { %v570_v27 = vpop.eup %569  ;;  %v318_v28 = vpop.xlane.xlu0 %317  ;;  %v344_v31 = vsel %vm177_vm8, %v568_v49, 0.0 }
 0x24c   :  { %579 = vpow2.f32 %v337_v55  ;;  %v326_v54 = vsub.f32 %v765_v56, %v318_v28  ;;  %358 = vperm.xlu0 %565, %v344_v31   ;;  %v343_v57 = vsel %vm176_vm9, %v570_v27, 0.0 }
 0x24d   :  { %353 = vperm.xlu1 %566, %v343_v57  }
 0x24e   :  { %v572_v48 = vpop.eup %571  ;;  %v341_v20 = vmul.f32 1.442695, %v326_v54 }
 0x24f   :  { %v574_v32 = vpop.eup %573  ;;  %v347_v15 = vsel %vm180_vm10, %v572_v48, 0.0 }
 0x250   :  { %581 = vpow2.f32 %v341_v20  ;;  %373 = vperm.xlu0 %565, %v347_v15   ;;  %v345_v33 = vsel %vm178_vm11, %v574_v32, 0.0 }
 0x251   :  { %363 = vperm.xlu1 %566, %v345_v33  }
 0x252   :  { %v576_v56 = vpop.eup %575 }
 0x253   :  { %v578_v34 = vpop.eup %577  ;;  %v349_v35 = vsel %vm182_vm12, %v576_v56, 0.0 }
 0x254   :  { %383 = vperm.xlu0 %565, %v349_v35   ;;  %v346_v25 = vsel %vm179_vm13, %v578_v34, 0.0 }
 0x255   :  { %368 = vperm.xlu1 %566, %v346_v25  }
 0x256   :  { %v580_v14 = vpop.eup %579 }
 0x257   :  { %v348_v36 = vsel %vm181_vm14, %v580_v14, 0.0 }
 0x259   :  { %378 = vperm.xlu1 %566, %v348_v36  }
 0x25a   :  { %v582_v37 = vpop.eup %581 }
 0x25b   :  { %v350_v38 = vsel %vm183_vm15, %v582_v37, 0.0 }
 0x25d   :  { %388 = vperm.xlu1 %566, %v350_v38  }
 0x2cb   :  { %v359_v39 = vpop.permute.xlu0 %358 }
 0x2cc   :  { %v354_v30 = vpop.permute.xlu1 %353  ;;  %v392_v41 = vmul.f32 %v796_v43, %v359_v39 }
 0x2cd   :  { %v391_v19 = vmul.f32 %v793_v42, %v354_v30 }
 0x2cf   :  { %v374_v52 = vpop.permute.xlu0 %373  ;;  %v399_v24 = vadd.f32 %v392_v41, %v391_v19 }
 0x2d0   :  { %v364_v45 = vpop.permute.xlu1 %363  ;;  %v395_v29 = vmul.f32 %v806_v51, %v374_v52 }
 0x2d1   :  { %v393_v46 = vmul.f32 %v803_v50, %v364_v45 }
 0x2d3   :  { %v400_v58 = vadd.f32 %v399_v24, %v393_v46  ;;  %v384_v4 = vpop.permute.xlu0 %383 }
 0x2d4   :  { %v369_v53 = vpop.permute.xlu1 %368  ;;  %v397_v42 = vmul.f32 %v816_v61, %v384_v4 }
 0x2d5   :  { %v394_v63 = vmul.f32 %v813_v59, %v369_v53  ;;  %v413_v59 = vshrl.u32 %v184_v3, 7 }
 0x2d7   :  { %v401_v60 = vadd.f32 %v400_v58, %v394_v63  ;;  %vm415_vm0 = vcmp.eq.s32.totalorder %v413_v59, 1  ;;  %vm414_vm1 = vcmp.eq.s32.totalorder %v413_v59, 0 }
 0x2d8   :  { %v379_v5 = vpop.permute.xlu1 %378 }
 0x2d9   :  { %v396_v7 = vmul.f32 %v824_v2, %v379_v5  ;;  %v402_v8 = vadd.f32 %v401_v60, %v395_v29 }
 0x2db   :  { %v403_v43 = vadd.f32 %v402_v8, %v396_v7 }
 0x2dc   :  { %v389_v62 = vpop.permute.xlu1 %388 }
 0x2dd   :  { %v398_v50 = vmul.f32 %v830_v1, %v389_v62  ;;  %v404_v9 = vadd.f32 %v403_v43, %v397_v42 }
 0x2df   :  { %v405_v10 = vadd.f32 %v404_v9, %v398_v50 }
 0x2e1   :  { %v406_v11 = vrot.slane %v405_v10, 4 }
 0x2e3   :  { %v407_v12 = vadd.f32 %v406_v11, %v405_v10 }
 0x2e5   :  { %v408_v13 = vrot.slane %v407_v12, 2 }
 0x2e7   :  { %v409_v51 = vadd.f32 %v408_v13, %v407_v12 }
 0x2e9   :  { %v410_v0 = vrot.slane %v409_v51, 1 }
 0x2eb   :  { %v411_v2 = vadd.f32 %v410_v0, %v409_v51 }
 0x2ed   :  { %v416_v6 = vsel %vm415_vm0, %v411_v2, 0.0 }
 0x2ee   :  { %v417_v61 = vsel %vm414_vm1, %v790_v40, %v416_v6 }
 0x2ef   :  { %418 = vst [vmem:[#allocation5] sm:$0xff] %v417_v61 }
 0x2f0   :  { %616 = shalt.err (!%p613_p12)
}
 0x2f1   :  { %s617_s11 = scalar_lea.hbm %s876_s4, 128 }
 0x2f2   :  { %p618_p13 = scmp.ne.s32.totalorder %s876_s4, %s617_s11  ;;  %p621_p0 = scmp.lt.u32.totalorder %s617_s11, %s876_s4 }
 0x2f4   :  { %p623_p1 = pnand %p621_p0, %p618_p13 }
 0x2f6   :  { %626 = shalt.err (!%p623_p1)
}
 0x2f7   :  { %428 = dma.vmem_to_hbm [thread:$0]  %s426_s2, 128, %s876_s4, [#allocation4]  }
 0x2f8   :  { %629 = dma.done.wait [#allocation4], 128  }
 0x2f9   :  { %630 = vsyncadd [#allocation4], 4294967168 }
 0x2fa   :  { %432 = vsyncpa [#allocation3], 1 }
 0x2fb   :  { %433 = vsyncpa [#allocation4], 1 }

</bundles_post_ra>
